<compile_context>
chip_gen: v7x
topology: tpu7x:2x2x1
jax: 0.10.0
libtpu: 0.0.40
codegen_flags: <defaults>
</compile_context>

<pallas_src>
import functools

import jax
import jax.numpy as jnp
from jax import lax
from jax.experimental import pallas as pl
from jax.experimental.pallas import tpu as pltpu

LANES = 128
SUBLANES = 8
MAX_BLK_ROWS = 2048   # (2048, 128) f32 tile = 1 MiB per input per grid step
CHUNK_ROWS = 8        # one f32 vreg per input per inner-loop chunk


def _ccc_moments_kernel(x_ref, y_ref, out_ref, *, rows, blk_rows, nblocks,
                        steps, need_mask):
    p = pl.program_id(0)          # megacore (parallel) axis
    i = pl.program_id(1)          # reduction (arbitrary) axis
    gb = p * steps + i            # global row-block index handled this step

    # Zero this core's resident accumulator slab on its first step.
    @pl.when(i == 0)
    def _init():
        out_ref[...] = jnp.zeros_like(out_ref)

    # Skip duplicate / out-of-range blocks (odd nblocks split across 2 cores).
    @pl.when(gb < nblocks)
    def _accumulate():
        # Load the five (8,128) accumulators into registers for the whole tile.
        sx = out_ref[0, 0]
        sy = out_ref[0, 1]
        sxx = out_ref[0, 2]
        syy = out_ref[0, 3]
        sxy = out_ref[0, 4]

        base_row = gb * blk_rows
        if need_mask:
            row_iota = lax.broadcasted_iota(jnp.int32, (CHUNK_ROWS, LANES), 0)

        nchunks = blk_rows // CHUNK_ROWS

        def chunk_body(c, carry):
            sx, sy, sxx, syy, sxy = carry
            r0 = pl.multiple_of(c * CHUNK_ROWS, CHUNK_ROWS)
            xb = x_ref[pl.ds(r0, CHUNK_ROWS), :].astype(jnp.float32)
            yb = y_ref[pl.ds(r0, CHUNK_ROWS), :].astype(jnp.float32)
            if need_mask:
                keep = (base_row + r0 + row_iota) < rows
                xb = jnp.where(keep, xb, 0.0)
                yb = jnp.where(keep, yb, 0.0)
            return (sx + xb,
                    sy + yb,
                    sxx + xb * xb,
                    syy + yb * yb,
                    sxy + xb * yb)

        sx, sy, sxx, syy, sxy = lax.fori_loop(
            0, nchunks, chunk_body, (sx, sy, sxx, syy, sxy),
            unroll=min(8, nchunks))

        # Single writeback of the register-resident accumulators per grid step.
        out_ref[0, 0] = sx
        out_ref[0, 1] = sy
        out_ref[0, 2] = sxx
        out_ref[0, 3] = syy
        out_ref[0, 4] = sxy


def _to_rows(v):
    """Flatten and pad to a multiple of (8,128)=1024 elements, reshape (rows,128)."""
    v_flat = jnp.ravel(v)
    n = v_flat.shape[0]
    pad = (-n) % (SUBLANES * LANES)
    if pad:
        v_flat = jnp.pad(v_flat, (0, pad))
    return v_flat.reshape((n + pad) // LANES, LANES)


def ccc_loss(x, y, eps=1e-8):
    """Pallas implementation of CCCLoss.forward(x, y). Returns an f32 scalar."""
    n = x.size
    x2d = _to_rows(x)   # keep original dtype in HBM; cast happens in-kernel
    y2d = _to_rows(y)
    rows = x2d.shape[0]

    blk_rows = min(MAX_BLK_ROWS, rows)            # multiple of 8, <= rows
    nblocks = -(-rows // blk_rows)                # ceil div (python int)
    steps = -(-nblocks // 2)                      # row-blocks per TensorCore
    need_mask = (rows % blk_rows) != 0

    kernel = functools.partial(
        _ccc_moments_kernel, rows=rows, blk_rows=blk_rows, nblocks=nblocks,
        steps=steps, need_mask=need_mask)

    def in_map(pcore, i):
        # Clamp so the (possibly) out-of-range duplicate block for core 1 never
        # DMAs past the array; the kernel skips accumulation for it.
        return (jnp.minimum(pcore * steps + i, nblocks - 1), 0)

    itemsize = jnp.dtype(x.dtype).itemsize + jnp.dtype(y.dtype).itemsize
    cost = pl.CostEstimate(
        flops=8 * rows * LANES,
        transcendentals=0,
        bytes_accessed=rows * LANES * itemsize + 2 * 5 * SUBLANES * LANES * 4,
    )

    moments = pl.pallas_call(
        kernel,
        out_shape=jax.ShapeDtypeStruct((2, 5, SUBLANES, LANES), jnp.float32),
        grid_spec=pltpu.PrefetchScalarGridSpec(
            num_scalar_prefetch=0,
            grid=(2, steps),
            in_specs=[
                pl.BlockSpec((blk_rows, LANES), in_map),
                pl.BlockSpec((blk_rows, LANES), in_map),
            ],
            out_specs=pl.BlockSpec((1, 5, SUBLANES, LANES),
                                   lambda pcore, i: (pcore, 0, 0, 0)),
        ),
        compiler_params=pltpu.CompilerParams(
            dimension_semantics=("parallel", "arbitrary")),
        cost_estimate=cost,
    )(x2d, y2d)

    # Tiny scalar glue on the reduced moments.
    sums = jnp.sum(moments, axis=(0, 2, 3))       # (5,) : sx, sy, sxx, syy, sxy
    sum_x, sum_y, sum_xx, sum_yy, sum_xy = (sums[0], sums[1], sums[2],
                                            sums[3], sums[4])

    n_f = jnp.float32(n)
    x_m = sum_x / n_f
    y_m = sum_y / n_f

    # Centered sums: sum(vx*vy), sum(vx^2), sum(vy^2)
    s_vxvy = sum_xy - n_f * x_m * y_m
    s_vx2 = sum_xx - n_f * x_m * x_m
    s_vy2 = sum_yy - n_f * y_m * y_m

    rho = s_vxvy / (jnp.sqrt(s_vx2) * jnp.sqrt(s_vy2) + eps)

    # torch.std default is the unbiased estimator (ddof=1)
    x_s = jnp.sqrt(s_vx2 / (n_f - 1.0))
    y_s = jnp.sqrt(s_vy2 / (n_f - 1.0))

    ccc = 2.0 * rho * x_s * y_s / (x_s * x_s + y_s * y_s + (x_m - y_m) ** 2)
    return 1.0 - ccc


if __name__ == "__main__":
    key = jax.random.PRNGKey(0)
    kx, ky = jax.random.split(key)
    # Small NCHW-like shapes; CCCLoss flattens everything anyway.
    x = jax.random.normal(kx, (2, 4, 16, 16), dtype=jnp.float32)
    y = 0.8 * x + 0.2 * jax.random.normal(ky, (2, 4, 16, 16), dtype=jnp.float32)

    loss = jax.jit(ccc_loss)(x, y)
    jax.block_until_ready(loss)

    # Pure-JAX reference sanity check (same math, no kernel).
    xf, yf = jnp.ravel(x), jnp.ravel(y)
    vx, vy = xf - jnp.mean(xf), yf - jnp.mean(yf)
    rho_r = jnp.sum(vx * vy) / (
        jnp.sqrt(jnp.sum(vx ** 2)) * jnp.sqrt(jnp.sum(vy ** 2)) + 1e-8
    )
    xs = jnp.std(xf, ddof=1)
    ys = jnp.std(yf, ddof=1)
    ccc_r = 2 * rho_r * xs * ys / (
        xs ** 2 + ys ** 2 + (jnp.mean(xf) - jnp.mean(yf)) ** 2
    )
    ref = 1.0 - ccc_r
    assert jnp.allclose(loss, ref, atol=1e-5, rtol=1e-4), (loss, ref)

    print("KERNEL_OK")
</pallas_src>

<mosaic_0001>
module attributes {stable_mosaic.version = 11 : i64} {
  func.func @_ccc_moments_kernel(%arg0: i32, %arg1: i32, %arg2: memref<16x128xf32, #tpu.memory_space<vmem>>, %arg3: memref<16x128xf32, #tpu.memory_space<vmem>>, %arg4: memref<1x5x8x128xf32, #tpu.memory_space<vmem>>) attributes {dimension_semantics = [#tpu.dimension_semantics<parallel>, #tpu.dimension_semantics<arbitrary>], iteration_bounds = array<i64: 2, 1>, scalar_prefetch = 0 : i64, scratch_operands = 0 : i64, tpu.core_type = #tpu.core_type<tc>, window_params = [{transform_indices = @transform_0, window_bounds = array<i64: 16, 128>}, {transform_indices = @transform_1, window_bounds = array<i64: 16, 128>}, {transform_indices = @transform_2, window_bounds = array<i64: 1, 5, 8, 128>}]} {
    %c1_i32 = arith.constant 1 : i32
    %0 = arith.muli %arg0, %c1_i32 : i32
    %1 = arith.addi %0, %arg1 : i32
    %c0_i32 = arith.constant 0 : i32
    %2 = arith.cmpi eq, %arg1, %c0_i32 : i32
    %3 = arith.extui %2 : i1 to i32
    %c0_i32_0 = arith.constant 0 : i32
    %4 = arith.cmpi ne, %3, %c0_i32_0 : i32
    scf.if %4 {
      %cst = arith.constant 0.000000e+00 : f32
      %8 = vector.broadcast %cst : f32 to vector<1x5x8x128xf32>
      %c0 = arith.constant 0 : index
      %c0_3 = arith.constant 0 : index
      %c0_4 = arith.constant 0 : index
      %c0_5 = arith.constant 0 : index
      %9 = vector.load %arg4[%c0, %c0_3, %c0_4, %c0_5] : memref<1x5x8x128xf32, #tpu.memory_space<vmem>>, vector<1x5x8x128xf32>
      tpu.vector_store %arg4[%c0, %c0_3, %c0_4, %c0_5], %8 {strides = array<i32>} : memref<1x5x8x128xf32, #tpu.memory_space<vmem>>, vector<1x5x8x128xf32>,
    } else {
    }
    %c1_i32_1 = arith.constant 1 : i32
    %5 = arith.cmpi slt, %1, %c1_i32_1 : i32
    %6 = arith.extui %5 : i1 to i32
    %c0_i32_2 = arith.constant 0 : i32
    %7 = arith.cmpi ne, %6, %c0_i32_2 : i32
    scf.if %7 {
      %c0 = arith.constant 0 : index
      %c0_3 = arith.constant 0 : index
      %c0_4 = arith.constant 0 : index
      %c0_5 = arith.constant 0 : index
      %8 = vector.load %arg4[%c0, %c0_3, %c0_4, %c0_5] : memref<1x5x8x128xf32, #tpu.memory_space<vmem>>, vector<1x1x8x128xf32>
      %9 = vector.shape_cast %8 : vector<1x1x8x128xf32> to vector<8x128xf32>
      %c0_6 = arith.constant 0 : index
      %c1 = arith.constant 1 : index
      %c0_7 = arith.constant 0 : index
      %c0_8 = arith.constant 0 : index
      %10 = vector.load %arg4[%c0_6, %c1, %c0_7, %c0_8] : memref<1x5x8x128xf32, #tpu.memory_space<vmem>>, vector<1x1x8x128xf32>
      %11 = vector.shape_cast %10 : vector<1x1x8x128xf32> to vector<8x128xf32>
      %c0_9 = arith.constant 0 : index
      %c2 = arith.constant 2 : index
      %c0_10 = arith.constant 0 : index
      %c0_11 = arith.constant 0 : index
      %12 = vector.load %arg4[%c0_9, %c2, %c0_10, %c0_11] : memref<1x5x8x128xf32, #tpu.memory_space<vmem>>, vector<1x1x8x128xf32>
      %13 = vector.shape_cast %12 : vector<1x1x8x128xf32> to vector<8x128xf32>
      %c0_12 = arith.constant 0 : index
      %c3 = arith.constant 3 : index
      %c0_13 = arith.constant 0 : index
      %c0_14 = arith.constant 0 : index
      %14 = vector.load %arg4[%c0_12, %c3, %c0_13, %c0_14] : memref<1x5x8x128xf32, #tpu.memory_space<vmem>>, vector<1x1x8x128xf32>
      %15 = vector.shape_cast %14 : vector<1x1x8x128xf32> to vector<8x128xf32>
      %c0_15 = arith.constant 0 : index
      %c4 = arith.constant 4 : index
      %c0_16 = arith.constant 0 : index
      %c0_17 = arith.constant 0 : index
      %16 = vector.load %arg4[%c0_15, %c4, %c0_16, %c0_17] : memref<1x5x8x128xf32, #tpu.memory_space<vmem>>, vector<1x1x8x128xf32>
      %17 = vector.shape_cast %16 : vector<1x1x8x128xf32> to vector<8x128xf32>
      %c0_i32_18 = arith.constant 0 : i32
      %c8_i32 = arith.constant 8 : i32
      %18 = arith.muli %c0_i32_18, %c8_i32 : i32
      %19 = tpu.assume_multiple %18, 8 : i32
      %20 = arith.index_cast %19 : i32 to index
      %c0_19 = arith.constant 0 : index
      %21 = vector.load %arg2[%20, %c0_19] : memref<16x128xf32, #tpu.memory_space<vmem>>, vector<8x128xf32>
      %22 = arith.index_cast %19 : i32 to index
      %c0_20 = arith.constant 0 : index
      %23 = vector.load %arg3[%22, %c0_20] : memref<16x128xf32, #tpu.memory_space<vmem>>, vector<8x128xf32>
      %24 = arith.addf %9, %21 : vector<8x128xf32>
      %25 = arith.addf %11, %23 : vector<8x128xf32>
      %26 = arith.mulf %21, %21 : vector<8x128xf32>
      %27 = arith.addf %13, %26 : vector<8x128xf32>
      %28 = arith.mulf %23, %23 : vector<8x128xf32>
      %29 = arith.addf %15, %28 : vector<8x128xf32>
      %30 = arith.mulf %21, %23 : vector<8x128xf32>
      %31 = arith.addf %17, %30 : vector<8x128xf32>
      %c1_i32_21 = arith.constant 1 : i32
      %c8_i32_22 = arith.constant 8 : i32
      %32 = arith.muli %c1_i32_21, %c8_i32_22 : i32
      %33 = tpu.assume_multiple %32, 8 : i32
      %34 = arith.index_cast %33 : i32 to index
      %c0_23 = arith.constant 0 : index
      %35 = vector.load %arg2[%34, %c0_23] : memref<16x128xf32, #tpu.memory_space<vmem>>, vector<8x128xf32>
      %36 = arith.index_cast %33 : i32 to index
      %c0_24 = arith.constant 0 : index
      %37 = vector.load %arg3[%36, %c0_24] : memref<16x128xf32, #tpu.memory_space<vmem>>, vector<8x128xf32>
      %38 = arith.addf %24, %35 : vector<8x128xf32>
      %39 = arith.addf %25, %37 : vector<8x128xf32>
      %40 = arith.mulf %35, %35 : vector<8x128xf32>
      %41 = arith.addf %27, %40 : vector<8x128xf32>
      %42 = arith.mulf %37, %37 : vector<8x128xf32>
      %43 = arith.addf %29, %42 : vector<8x128xf32>
      %44 = arith.mulf %35, %37 : vector<8x128xf32>
      %45 = arith.addf %31, %44 : vector<8x128xf32>
      %c2_i32 = arith.constant 2 : i32
      %c0_25 = arith.constant 0 : index
      %c0_26 = arith.constant 0 : index
      %c0_27 = arith.constant 0 : index
      %c0_28 = arith.constant 0 : index
      %46 = vector.load %arg4[%c0_25, %c0_26, %c0_27, %c0_28] : memref<1x5x8x128xf32, #tpu.memory_space<vmem>>, vector<1x1x8x128xf32>
      %47 = vector.shape_cast %46 : vector<1x1x8x128xf32> to vector<8x128xf32>
      %48 = vector.shape_cast %38 : vector<8x128xf32> to vector<1x1x8x128xf32>
      tpu.vector_store %arg4[%c0_25, %c0_26, %c0_27, %c0_28], %48 {strides = array<i32>} : memref<1x5x8x128xf32, #tpu.memory_space<vmem>>, vector<1x1x8x128xf32>,
      %c0_29 = arith.constant 0 : index
      %c1_30 = arith.constant 1 : index
      %c0_31 = arith.constant 0 : index
      %c0_32 = arith.constant 0 : index
      %49 = vector.load %arg4[%c0_29, %c1_30, %c0_31, %c0_32] : memref<1x5x8x128xf32, #tpu.memory_space<vmem>>, vector<1x1x8x128xf32>
      %50 = vector.shape_cast %49 : vector<1x1x8x128xf32> to vector<8x128xf32>
      %51 = vector.shape_cast %39 : vector<8x128xf32> to vector<1x1x8x128xf32>
      tpu.vector_store %arg4[%c0_29, %c1_30, %c0_31, %c0_32], %51 {strides = array<i32>} : memref<1x5x8x128xf32, #tpu.memory_space<vmem>>, vector<1x1x8x128xf32>,
      %c0_33 = arith.constant 0 : index
      %c2_34 = arith.constant 2 : index
      %c0_35 = arith.constant 0 : index
      %c0_36 = arith.constant 0 : index
      %52 = vector.load %arg4[%c0_33, %c2_34, %c0_35, %c0_36] : memref<1x5x8x128xf32, #tpu.memory_space<vmem>>, vector<1x1x8x128xf32>
      %53 = vector.shape_cast %52 : vector<1x1x8x128xf32> to vector<8x128xf32>
      %54 = vector.shape_cast %41 : vector<8x128xf32> to vector<1x1x8x128xf32>
      tpu.vector_store %arg4[%c0_33, %c2_34, %c0_35, %c0_36], %54 {strides = array<i32>} : memref<1x5x8x128xf32, #tpu.memory_space<vmem>>, vector<1x1x8x128xf32>,
      %c0_37 = arith.constant 0 : index
      %c3_38 = arith.constant 3 : index
      %c0_39 = arith.constant 0 : index
      %c0_40 = arith.constant 0 : index
      %55 = vector.load %arg4[%c0_37, %c3_38, %c0_39, %c0_40] : memref<1x5x8x128xf32, #tpu.memory_space<vmem>>, vector<1x1x8x128xf32>
      %56 = vector.shape_cast %55 : vector<1x1x8x128xf32> to vector<8x128xf32>
      %57 = vector.shape_cast %43 : vector<8x128xf32> to vector<1x1x8x128xf32>
      tpu.vector_store %arg4[%c0_37, %c3_38, %c0_39, %c0_40], %57 {strides = array<i32>} : memref<1x5x8x128xf32, #tpu.memory_space<vmem>>, vector<1x1x8x128xf32>,
      %c0_41 = arith.constant 0 : index
      %c4_42 = arith.constant 4 : index
      %c0_43 = arith.constant 0 : index
      %c0_44 = arith.constant 0 : index
      %58 = vector.load %arg4[%c0_41, %c4_42, %c0_43, %c0_44] : memref<1x5x8x128xf32, #tpu.memory_space<vmem>>, vector<1x1x8x128xf32>
      %59 = vector.shape_cast %58 : vector<1x1x8x128xf32> to vector<8x128xf32>
      %60 = vector.shape_cast %45 : vector<8x128xf32> to vector<1x1x8x128xf32>
      tpu.vector_store %arg4[%c0_41, %c4_42, %c0_43, %c0_44], %60 {strides = array<i32>} : memref<1x5x8x128xf32, #tpu.memory_space<vmem>>, vector<1x1x8x128xf32>,
    } else {
    }
    return
  }
  func.func @transform_0(%arg0: i32, %arg1: i32) -> (i32, i32) {
    %c1_i32 = arith.constant 1 : i32
    %0 = arith.muli %arg0, %c1_i32 : i32
    %1 = arith.addi %0, %arg1 : i32
    %c0_i32 = arith.constant 0 : i32
    %2 = arith.minsi %1, %c0_i32 : i32
    %c0_i32_0 = arith.constant 0 : i32
    %c0_i32_1 = arith.constant 0 : i32
    return %2, %c0_i32_0 : i32, i32
  }
  func.func @transform_1(%arg0: i32, %arg1: i32) -> (i32, i32) {
    %c1_i32 = arith.constant 1 : i32
    %0 = arith.muli %arg0, %c1_i32 : i32
    %1 = arith.addi %0, %arg1 : i32
    %c0_i32 = arith.constant 0 : i32
    %2 = arith.minsi %1, %c0_i32 : i32
    %c0_i32_0 = arith.constant 0 : i32
    %c0_i32_1 = arith.constant 0 : i32
    return %2, %c0_i32_0 : i32, i32
  }
  func.func @transform_2(%arg0: i32, %arg1: i32) -> (i32, i32, i32, i32) {
    %c0_i32 = arith.constant 0 : i32
    %c0_i32_0 = arith.constant 0 : i32
    %c0_i32_1 = arith.constant 0 : i32
    %c0_i32_2 = arith.constant 0 : i32
    return %arg0, %c0_i32, %c0_i32_0, %c0_i32_1 : i32, i32, i32, i32
  }
}

</mosaic_0001>

<bundles_post_ra>
// kernel: ccc_loss.1
= control target key start
LH: loop header
LB: loop body
LE: loop exit
PB: predicated region body
PF: predicated region fallthrough
CT: control target
= control target key end

     0   :  { %s436_s9 = smov 0   ;;  %s438_s10 = smov 0   ;;  %s489_s0 = inlined_call_operand.vmem [shape: f32[16,128], index: 0, kind: input, shape index: {}]   ;;  %s490_s1 = inlined_call_operand.vmem [shape: f32[16,128], index: 1, kind: input, shape index: {}]   ;;  %s491_s2 = inlined_call_operand.vmem [shape: f32[2,5,8,128], index: 2, kind: output, shape index: {}]  }
   0x1   :  { %s440_s11 = smov 0  }
   0x2 LB: > { %s24_s12 = sadd.s32 1, %s414_s10  ;;  %p351_p0 = scmp.ge.s32.totalorder %s418_s11, 1  ;;  %s418_s11 = sphi %s440_s11, %s12_s11   ;;  %s414_s10 = sphi %s438_s10, %s493_s10   ;;  %s410_s9 = sphi %s436_s9, %s492_s9  }
   0x3   : > { %p26_p1 = scmp.ge.s32.totalorder %s24_s12, 2  ;;  %p160_p2 = scmp.lt.s32.totalorder %s418_s11, 3 }
   0x5   : > { %s495_s12 = smov (%p26_p1, %s24_s12), 0  ;;  %p161_p3 = pnand %p351_p0, %p160_p2 }
   0x6   : > { %p194_p4 = scmp.lt.s32.totalorder (!%p161_p3), %s410_s9, 0  ;;  %p217_p5 = scmp.lt.s32.totalorder (!%p161_p3), %s410_s9, 1  ;;  %v420_v0 = vmov (!%p161_p3), 0.0  }
   0x7   : > { %164 = sbr.rel (%p161_p3) target bundleno = 35 (0x23), region = 28  ;;  %p357_p7 = scmp.ge.s32.totalorder (!%p161_p3), %s410_s9, 1 }
   0xe   : > { %s195_s13 = scalar_select %p194_p4, %s410_s9, 0 }
   0xf   : > { %s218_s14 = scalar_select %p217_p5, %s410_s9, 1 }
  0x10   : > { %s352_s15 = sshll.u32 %s195_s13, 1  ;;  %235 = sbr.rel (%p357_p7) target bundleno = 35 (0x23), region = 36 }
  0x11   : > { %p197_p6 = scmp.lt.s32.totalorder %s352_s15, 1  ;;  %s370_s16 = smul.u32 40, %s218_s14 }
  0x13   : > { %s497_s15 = smov (!%p197_p6, %s352_s15), 1  ;;  %s457_s19 = scalar_lea.vmem %s491_s2, %s370_s16 }
  0x14   : > { %s353_s20 = sshll.u32 %s497_s15, 3  ;;  %227 = vst [vmem:[%s457_s19] sm:$0xff] %v420_v0  ;;  %228 = vst [vmem:[%s457_s19 + $0x8] sm:$0xff] %v420_v0 }
  0x15   : > { %229 = vst [vmem:[%s457_s19 + $0x10] sm:$0xff] %v420_v0  ;;  %230 = vst [vmem:[%s457_s19 + $0x18] sm:$0xff] %v420_v0  ;;  %s200_s23 = scalar_lea.vmem %s489_s0, %s353_s20  ;;  %s212_s26 = scalar_lea.vmem %s490_s1, %s353_s20 }
  0x16   : > { %231 = vst [vmem:[%s457_s19 + $0x20] sm:$0xff] %v420_v0  ;;  %v245_v2 = vld [vmem:[%s200_s23] sm:$0xff] (!%p357_p7)  ;;  %v362_v3 = vld [vmem:[%s200_s23 + $0x8] sm:$0xff] (!%p357_p7) }
  0x17   : > { %v246_v6 = vld [vmem:[%s212_s26] sm:$0xff]  ;;  %v363_v7 = vld [vmem:[%s212_s26 + $0x8] sm:$0xff]  ;;  %v249_v8 = vmul.f32 %v245_v2, %v245_v2  ;;  %v261_v9 = vmul.f32 %v362_v3, %v362_v3 }
  0x18   : > { %v251_v13 = vmul.f32 %v246_v6, %v246_v6  ;;  %v263_v14 = vmul.f32 %v363_v7, %v363_v7  ;;  %v253_v16 = vmul.f32 %v246_v6, %v245_v2  ;;  %v265_v19 = vmul.f32 %v363_v7, %v362_v3 }
  0x1b   : > { %v236_v1 = vld [vmem:[%s457_s19] sm:$0xff]  ;;  %v358_v5 = vld [vmem:[%s457_s19 + $0x8] sm:$0xff] }
  0x1c   : > { %v247_v4 = vadd.f32 %v245_v2, %v236_v1  ;;  %v248_v10 = vadd.f32 %v358_v5, %v246_v6  ;;  %v359_v11 = vld [vmem:[%s457_s19 + $0x10] sm:$0xff]  ;;  %v360_v12 = vld [vmem:[%s457_s19 + $0x18] sm:$0xff] }
  0x1d   : > { %v361_v15 = vld [vmem:[%s457_s19 + $0x20] sm:$0xff]  ;;  %v250_v18 = vadd.f32 %v359_v11, %v249_v8  ;;  %v252_v21 = vadd.f32 %v360_v12, %v251_v13 }
  0x1e   : > { %v259_v17 = vadd.f32 %v362_v3, %v247_v4  ;;  %v260_v20 = vadd.f32 %v363_v7, %v248_v10  ;;  %v254_v22 = vadd.f32 %v361_v15, %v253_v16 }
  0x1f   : > { %v262_v23 = vadd.f32 %v261_v9, %v250_v18  ;;  %v264_v24 = vadd.f32 %v263_v14, %v252_v21 }
  0x20   : > { %267 = vst [vmem:[%s457_s19] sm:$0xff] %v259_v17  ;;  %364 = vst [vmem:[%s457_s19 + $0x8] sm:$0xff] %v260_v20  ;;  %v266_v25 = vadd.f32 %v265_v19, %v254_v22 }
  0x21   : > { %365 = vst [vmem:[%s457_s19 + $0x10] sm:$0xff] %v262_v23  ;;  %366 = vst [vmem:[%s457_s19 + $0x18] sm:$0xff] %v264_v24 }
  0x22   : > { %367 = vst [vmem:[%s457_s19 + $0x20] sm:$0xff] %v266_v25 }
  0x23 PF: > { %s12_s11 = sadd.s32 1, %s418_s11   ;;  %s492_s9 = smov %s414_s10 }
  0x24   : > { %p9_p8 = scmp.ge.s32.totalorder %s12_s11, 4   ;;  %s493_s10 = smov %s495_s12 }
  0x26   :  { %11 = sbr.rel (!%p9_p8) target bundleno = 2 (0x2), region = 75 }

</bundles_post_ra>
